<compile_context>
chip_gen: v6e
topology: v6e:2x2x1
jax: 0.10.0
libtpu: 0.0.40
codegen_flags: <defaults>
</compile_context>

<pallas_src>
import math
import functools

import jax
import jax.numpy as jnp
from jax.experimental import pallas as pl
from jax.experimental.pallas import tpu as pltpu

# ---------------- config (mirrors CONFIG.quantum.*) ----------------
LATTICE_DIM = 256            # CONFIG.quantum.lattice_dimension
NOISE_WIDTH = 0.1            # CONFIG.quantum.post_quantum_params['noise_width']
LN_EPS = 1e-5
_GELU_C = math.sqrt(2.0 / math.pi)


def _round_up(x, m):
    return ((x + m - 1) // m) * m


def _vmem_caps():
    """(vmem_limit_cap, effective_resident_param_budget) in bytes, per TPU gen."""
    physical = 128 * 1024 * 1024
    try:
        d = jax.devices()[0]
        if d.platform == "tpu" and "v7" in d.device_kind.lower():
            physical = 64 * 1024 * 1024
    except Exception:
        pass
    if physical >= 128 * 1024 * 1024:        # v5e / v6e: 128 MiB physical VMEM
        return 104 * 1024 * 1024, 80 * 1024 * 1024
    # v7x: 64 MiB physical, dual-TC -> leave headroom for scratch + stream bufs
    return 52 * 1024 * 1024, 36 * 1024 * 1024


def _pick_tm(M):
    """Row tile: >=2 grid programs when M > 16 (dual-TC), <=1024, multiple of 16."""
    if M <= 16:
        return M
    return min(1024, _round_up(pl.cdiv(M, 2), 16))


# ---------------- fused multi-layer kernel ----------------
def _qr_fused_kernel(num_layers, x_ref, *refs):
    """refs = [noise, w_t(bf16), b, gamma, beta] * num_layers + [o_ref].

    noise  : (tm, d_in)  bf16, already scaled by noise_width (streamed).
    w_t    : (d_in, d_out) bf16, noisy weight pre-transposed (VMEM-resident).
    b/gamma/beta : (1, d_out) f32 (VMEM-resident).
    """
    o_ref = refs[-1]
    h = x_ref[...].astype(jnp.float32)                       # (tm, d_in0)
    for l in range(num_layers):
        n_ref, w_ref, b_ref, g_ref, beta_ref = refs[5 * l: 5 * l + 5]

        # ---- lattice noise on the activations (precomputed, streamed) ----
        h = h + n_ref[...].astype(jnp.float32)

        # ---- QuantumResistantLinear: noisy weight baked in the wrapper ----
        # bf16 MXU operands, f32 accumulator.
        z = jnp.dot(h.astype(jnp.bfloat16), w_ref[...],
                    preferred_element_type=jnp.float32)       # (tm, d_out)
        z = z + b_ref[...]

        # ---- LayerNorm over last dim (f32) ----
        mean = jnp.mean(z, axis=-1, keepdims=True)
        c = z - mean
        var = jnp.mean(c * c, axis=-1, keepdims=True)
        zn = c * jax.lax.rsqrt(var + LN_EPS)
        zn = zn * g_ref[...] + beta_ref[...]

        # ---- tanh-approx GELU (EUP tanh overlaps VPU work) ----
        h = 0.5 * zn * (1.0 + jnp.tanh(_GELU_C * (zn + 0.044715 * zn * zn * zn)))
        # TODO(synk): Dropout omitted (inference-mode identity).

    o_ref[...] = h.astype(o_ref.dtype)


def _qr_group_call(x, layer_params, *, tm, out_dtype):
    """One pallas_call over a group of fused layers.

    x            : (M, d_in0)
    layer_params : list of (noise[M,d_in] bf16, w_t[d_in,d_out] bf16,
                            b[1,d_out], gamma[1,d_out], beta[1,d_out])
    """
    M, d_in0 = x.shape
    d_out = layer_params[-1][1].shape[1]
    num_layers = len(layer_params)
    grid = (pl.cdiv(M, tm),)

    def res_spec(shape):      # resident in VMEM across all row tiles
        return pl.BlockSpec(shape, lambda i: (0, 0))

    in_specs = [pl.BlockSpec((tm, d_in0), lambda i: (i, 0))]
    flat_inputs = [x]
    stream_bytes = 2 * tm * d_in0 * x.dtype.itemsize          # double-buffered
    param_bytes = 0
    for (noise, w_t, b, g, beta) in layer_params:
        in_specs.append(pl.BlockSpec((tm, noise.shape[1]), lambda i: (i, 0)))
        in_specs += [res_spec(w_t.shape), res_spec(b.shape),
                     res_spec(g.shape), res_spec(beta.shape)]
        flat_inputs += [noise, w_t, b, g, beta]
        stream_bytes += 2 * tm * noise.shape[1] * noise.dtype.itemsize
        param_bytes += sum(a.size * a.dtype.itemsize for a in (w_t, b, g, beta))
    stream_bytes += 2 * tm * d_out * jnp.dtype(out_dtype).itemsize

    # Resident blocks are double-buffered by default -> 2x footprint; budget
    # for it explicitly (pl.Buffered(1) would halve it but is left at the
    # portable default).  Add slack for compiler internal scratch.
    vmem_cap, _ = _vmem_caps()
    need = 2 * param_bytes + stream_bytes + 4 * 1024 * 1024
    vmem_limit = int(min(vmem_cap, max(need, 16 * 1024 * 1024)))

    kernel = functools.partial(_qr_fused_kernel, num_layers)
    return pl.pallas_call(
        kernel,
        out_shape=jax.ShapeDtypeStruct((M, d_out), out_dtype),
        grid_spec=pltpu.PrefetchScalarGridSpec(
            num_scalar_prefetch=0,
            grid=grid,
            in_specs=in_specs,
            out_specs=pl.BlockSpec((tm, d_out), lambda i: (i, 0)),
        ),
        compiler_params=pltpu.CompilerParams(
            dimension_semantics=("parallel",),
            vmem_limit_bytes=vmem_limit,
        ),
    )(*flat_inputs)


# ---------------- parameters / top-level forward ----------------
def init_params(key, input_dim, hidden_dim, num_layers):
    """Deterministic parameter init matching the torch module's shapes."""
    params = []
    for i in range(num_layers):
        d_in = input_dim if i == 0 else hidden_dim
        key, kw = jax.random.split(key)
        w = jax.random.normal(kw, (hidden_dim, d_in), jnp.float32) / math.sqrt(d_in)
        b = jnp.zeros((hidden_dim,), jnp.float32)
        gamma = jnp.ones((hidden_dim,), jnp.float32)
        beta = jnp.zeros((hidden_dim,), jnp.float32)
        params.append((w, b, gamma, beta))
    return tuple(params)


def quantum_resistant_forward(x, params, noise_key):
    """Full QuantumResistantLayers.forward.

    x      : (..., input_dim)
    params : tuple of (w[d_out,d_in], b[d_out], gamma[d_out], beta[d_out])
    """
    orig_shape = x.shape
    d_in0 = orig_shape[-1]
    M = 1
    for s in orig_shape[:-1]:
        M *= s
    h = x.reshape(M, d_in0).astype(jnp.float32)

    num_layers = len(params)
    keys = jax.random.split(noise_key, 2 * num_layers)

    # One-shot per-forward noise draws (hoisted out of the kernel / grid loop):
    #   * input lattice noise, scaled by noise_width, shipped bf16 (streamed)
    #   * noisy weight, pre-transposed to (d_in, d_out), shipped bf16 (resident)
    kparams = []
    for l, (w, b, gamma, beta) in enumerate(params):
        d_out, d_in = w.shape
        in_noise = (NOISE_WIDTH *
                    jax.random.normal(keys[2 * l], (M, d_in), jnp.float32)
                    ).astype(jnp.bfloat16)
        w_scale = math.sqrt(LATTICE_DIM) / d_out
        w_noisy = w + w_scale * jax.random.normal(keys[2 * l + 1], w.shape,
                                                  jnp.float32)
        kparams.append((in_noise,
                        w_noisy.T.astype(jnp.bfloat16),
                        b.reshape(1, -1).astype(jnp.float32),
                        gamma.reshape(1, -1).astype(jnp.float32),
                        beta.reshape(1, -1).astype(jnp.float32)))

    # Group consecutive layers so their (double-buffered) resident parameters
    # fit the generation-specific VMEM budget.
    _, param_budget = _vmem_caps()
    groups, cur, cur_eff = [], [], 0
    for lp in kparams:
        eff = 2 * sum(a.size * a.dtype.itemsize for a in lp[1:])
        if cur and cur_eff + eff > param_budget:
            groups.append(cur)
            cur, cur_eff = [], 0
        cur.append(lp)
        cur_eff += eff
    if cur:
        groups.append(cur)

    tm = _pick_tm(M)
    for gi, grp in enumerate(groups):
        last = gi == len(groups) - 1
        # Inter-group activations round-trip HBM in bf16; final output in f32.
        out_dtype = jnp.float32 if last else jnp.bfloat16
        h = _qr_group_call(h, grp, tm=tm, out_dtype=out_dtype)

    return h.reshape(orig_shape[:-1] + (h.shape[-1],))


if __name__ == "__main__":
    INPUT_DIM = 64
    HIDDEN_DIM = 128      # lane-dense feature dim (multiple of 128)
    NUM_LAYERS = 3
    BATCH, SEQ = 4, 16    # M = 64 flattened rows -> tm = 32, grid = (2,)

    root = jax.random.PRNGKey(0)
    k_x, k_params, k_noise = jax.random.split(root, 3)

    x = jax.random.normal(k_x, (BATCH, SEQ, INPUT_DIM), jnp.float32)
    params = init_params(k_params, INPUT_DIM, HIDDEN_DIM, NUM_LAYERS)

    fwd = jax.jit(quantum_resistant_forward)
    out = jax.block_until_ready(fwd(x, params, k_noise))

    assert out.shape == (BATCH, SEQ, HIDDEN_DIM), out.shape
    assert bool(jnp.all(jnp.isfinite(out)))
    print("KERNEL_OK")
</pallas_src>

<mosaic_0001>
module attributes {stable_mosaic.version = 11 : i64} {
  func.func @_qr_fused_kernel(%arg0: i32, %arg1: memref<32x64xf32, #tpu.memory_space<vmem>>, %arg2: memref<32x64xbf16, #tpu.memory_space<vmem>>, %arg3: memref<64x128xbf16, #tpu.memory_space<vmem>>, %arg4: memref<1x128xf32, #tpu.memory_space<vmem>>, %arg5: memref<1x128xf32, #tpu.memory_space<vmem>>, %arg6: memref<1x128xf32, #tpu.memory_space<vmem>>, %arg7: memref<32x128xbf16, #tpu.memory_space<vmem>>, %arg8: memref<128x128xbf16, #tpu.memory_space<vmem>>, %arg9: memref<1x128xf32, #tpu.memory_space<vmem>>, %arg10: memref<1x128xf32, #tpu.memory_space<vmem>>, %arg11: memref<1x128xf32, #tpu.memory_space<vmem>>, %arg12: memref<32x128xbf16, #tpu.memory_space<vmem>>, %arg13: memref<128x128xbf16, #tpu.memory_space<vmem>>, %arg14: memref<1x128xf32, #tpu.memory_space<vmem>>, %arg15: memref<1x128xf32, #tpu.memory_space<vmem>>, %arg16: memref<1x128xf32, #tpu.memory_space<vmem>>, %arg17: memref<32x128xf32, #tpu.memory_space<vmem>>) attributes {dimension_semantics = [#tpu.dimension_semantics<parallel>], iteration_bounds = array<i64: 2>, scalar_prefetch = 0 : i64, scratch_operands = 0 : i64, tpu.core_type = #tpu.core_type<tc>, window_params = [{transform_indices = @transform_0, window_bounds = array<i64: 32, 64>}, {transform_indices = @transform_1, window_bounds = array<i64: 32, 64>}, {pipeline_mode = #tpu.pipeline_mode<synchronous>, transform_indices = @transform_2, window_bounds = array<i64: 64, 128>}, {pipeline_mode = #tpu.pipeline_mode<synchronous>, transform_indices = @transform_3, window_bounds = array<i64: 1, 128>}, {pipeline_mode = #tpu.pipeline_mode<synchronous>, transform_indices = @transform_4, window_bounds = array<i64: 1, 128>}, {pipeline_mode = #tpu.pipeline_mode<synchronous>, transform_indices = @transform_5, window_bounds = array<i64: 1, 128>}, {transform_indices = @transform_6, window_bounds = array<i64: 32, 128>}, {pipeline_mode = #tpu.pipeline_mode<synchronous>, transform_indices = @transform_7, window_bounds = array<i64: 128, 128>}, {pipeline_mode = #tpu.pipeline_mode<synchronous>, transform_indices = @transform_8, window_bounds = array<i64: 1, 128>}, {pipeline_mode = #tpu.pipeline_mode<synchronous>, transform_indices = @transform_9, window_bounds = array<i64: 1, 128>}, {pipeline_mode = #tpu.pipeline_mode<synchronous>, transform_indices = @transform_10, window_bounds = array<i64: 1, 128>}, {transform_indices = @transform_11, window_bounds = array<i64: 32, 128>}, {pipeline_mode = #tpu.pipeline_mode<synchronous>, transform_indices = @transform_12, window_bounds = array<i64: 128, 128>}, {pipeline_mode = #tpu.pipeline_mode<synchronous>, transform_indices = @transform_13, window_bounds = array<i64: 1, 128>}, {pipeline_mode = #tpu.pipeline_mode<synchronous>, transform_indices = @transform_14, window_bounds = array<i64: 1, 128>}, {pipeline_mode = #tpu.pipeline_mode<synchronous>, transform_indices = @transform_15, window_bounds = array<i64: 1, 128>}, {transform_indices = @transform_16, window_bounds = array<i64: 32, 128>}]} {
    %c0 = arith.constant 0 : index
    %c0_0 = arith.constant 0 : index
    %0 = vector.load %arg1[%c0, %c0_0] : memref<32x64xf32, #tpu.memory_space<vmem>>, vector<32x64xf32>
    %c0_1 = arith.constant 0 : index
    %c0_2 = arith.constant 0 : index
    %1 = vector.load %arg2[%c0_1, %c0_2] : memref<32x64xbf16, #tpu.memory_space<vmem>>, vector<32x64xbf16>
    %2 = arith.extf %1 : vector<32x64xbf16> to vector<32x64xf32>
    %3 = arith.addf %0, %2 : vector<32x64xf32>
    %4 = arith.truncf %3 : vector<32x64xf32> to vector<32x64xbf16>
    %c0_3 = arith.constant 0 : index
    %c0_4 = arith.constant 0 : index
    %5 = vector.load %arg3[%c0_3, %c0_4] : memref<64x128xbf16, #tpu.memory_space<vmem>>, vector<64x128xbf16>
    %cst = arith.constant dense<0.000000e+00> : vector<32x128xf32>
    %6 = tpu.matmul %4, %5, %cst {dimension_numbers = #tpu.dot_dimension_numbers<[1], [0], [0], [1], [0, 0, 1, 1], [], []>} : vector<32x64xbf16>, vector<64x128xbf16>, vector<32x128xf32> -> vector<32x128xf32>
    %c0_5 = arith.constant 0 : index
    %c0_6 = arith.constant 0 : index
    %7 = vector.load %arg4[%c0_5, %c0_6] : memref<1x128xf32, #tpu.memory_space<vmem>>, vector<1x128xf32>
    %8 = vector.broadcast %7 : vector<1x128xf32> to vector<32x128xf32>
    %9 = arith.addf %6, %8 : vector<32x128xf32>
    %cst_7 = arith.constant dense<0.000000e+00> : vector<32xf32>
    %10 = vector.multi_reduction <add>, %9, %cst_7 [1] : vector<32x128xf32> to vector<32xf32>
    %11 = vector.shape_cast %10 : vector<32xf32> to vector<32x1xf32>
    %cst_8 = arith.constant 1.280000e+02 : f32
    %12 = vector.broadcast %cst_8 : f32 to vector<32x1xf32>
    %13 = arith.divf %11, %12 : vector<32x1xf32>
    %14 = vector.broadcast %13 : vector<32x1xf32> to vector<32x128xf32>
    %15 = arith.subf %9, %14 : vector<32x128xf32>
    %16 = arith.mulf %15, %15 : vector<32x128xf32>
    %cst_9 = arith.constant dense<0.000000e+00> : vector<32xf32>
    %17 = vector.multi_reduction <add>, %16, %cst_9 [1] : vector<32x128xf32> to vector<32xf32>
    %18 = vector.shape_cast %17 : vector<32xf32> to vector<32x1xf32>
    %cst_10 = arith.constant 1.280000e+02 : f32
    %19 = vector.broadcast %cst_10 : f32 to vector<32x1xf32>
    %20 = arith.divf %18, %19 : vector<32x1xf32>
    %cst_11 = arith.constant 9.99999974E-6 : f32
    %21 = vector.broadcast %cst_11 : f32 to vector<32x1xf32>
    %22 = arith.addf %20, %21 : vector<32x1xf32>
    %23 = math.rsqrt %22 : vector<32x1xf32>
    %24 = vector.broadcast %23 : vector<32x1xf32> to vector<32x128xf32>
    %25 = arith.mulf %15, %24 : vector<32x128xf32>
    %c0_12 = arith.constant 0 : index
    %c0_13 = arith.constant 0 : index
    %26 = vector.load %arg5[%c0_12, %c0_13] : memref<1x128xf32, #tpu.memory_space<vmem>>, vector<1x128xf32>
    %27 = vector.broadcast %26 : vector<1x128xf32> to vector<32x128xf32>
    %28 = arith.mulf %25, %27 : vector<32x128xf32>
    %c0_14 = arith.constant 0 : index
    %c0_15 = arith.constant 0 : index
    %29 = vector.load %arg6[%c0_14, %c0_15] : memref<1x128xf32, #tpu.memory_space<vmem>>, vector<1x128xf32>
    %30 = vector.broadcast %29 : vector<1x128xf32> to vector<32x128xf32>
    %31 = arith.addf %28, %30 : vector<32x128xf32>
    %cst_16 = arith.constant 5.000000e-01 : f32
    %32 = vector.broadcast %cst_16 : f32 to vector<32x128xf32>
    %33 = arith.mulf %32, %31 : vector<32x128xf32>
    %cst_17 = arith.constant 4.471500e-02 : f32
    %34 = vector.broadcast %cst_17 : f32 to vector<32x128xf32>
    %35 = arith.mulf %34, %31 : vector<32x128xf32>
    %36 = arith.mulf %35, %31 : vector<32x128xf32>
    %37 = arith.mulf %36, %31 : vector<32x128xf32>
    %38 = arith.addf %31, %37 : vector<32x128xf32>
    %cst_18 = arith.constant 0.797884583 : f32
    %39 = vector.broadcast %cst_18 : f32 to vector<32x128xf32>
    %40 = arith.mulf %39, %38 : vector<32x128xf32>
    %41 = math.tanh %40 : vector<32x128xf32>
    %cst_19 = arith.constant 1.000000e+00 : f32
    %42 = vector.broadcast %cst_19 : f32 to vector<32x128xf32>
    %43 = arith.addf %42, %41 : vector<32x128xf32>
    %44 = arith.mulf %33, %43 : vector<32x128xf32>
    %c0_20 = arith.constant 0 : index
    %c0_21 = arith.constant 0 : index
    %45 = vector.load %arg7[%c0_20, %c0_21] : memref<32x128xbf16, #tpu.memory_space<vmem>>, vector<32x128xbf16>
    %46 = arith.extf %45 : vector<32x128xbf16> to vector<32x128xf32>
    %47 = arith.addf %44, %46 : vector<32x128xf32>
    %48 = arith.truncf %47 : vector<32x128xf32> to vector<32x128xbf16>
    %c0_22 = arith.constant 0 : index
    %c0_23 = arith.constant 0 : index
    %49 = vector.load %arg8[%c0_22, %c0_23] : memref<128x128xbf16, #tpu.memory_space<vmem>>, vector<128x128xbf16>
    %cst_24 = arith.constant dense<0.000000e+00> : vector<32x128xf32>
    %50 = tpu.matmul %48, %49, %cst_24 {dimension_numbers = #tpu.dot_dimension_numbers<[1], [0], [0], [1], [0, 0, 1, 1], [], []>} : vector<32x128xbf16>, vector<128x128xbf16>, vector<32x128xf32> -> vector<32x128xf32>
    %c0_25 = arith.constant 0 : index
    %c0_26 = arith.constant 0 : index
    %51 = vector.load %arg9[%c0_25, %c0_26] : memref<1x128xf32, #tpu.memory_space<vmem>>, vector<1x128xf32>
    %52 = vector.broadcast %51 : vector<1x128xf32> to vector<32x128xf32>
    %53 = arith.addf %50, %52 : vector<32x128xf32>
    %cst_27 = arith.constant dense<0.000000e+00> : vector<32xf32>
    %54 = vector.multi_reduction <add>, %53, %cst_27 [1] : vector<32x128xf32> to vector<32xf32>
    %55 = vector.shape_cast %54 : vector<32xf32> to vector<32x1xf32>
    %cst_28 = arith.constant 1.280000e+02 : f32
    %56 = vector.broadcast %cst_28 : f32 to vector<32x1xf32>
    %57 = arith.divf %55, %56 : vector<32x1xf32>
    %58 = vector.broadcast %57 : vector<32x1xf32> to vector<32x128xf32>
    %59 = arith.subf %53, %58 : vector<32x128xf32>
    %60 = arith.mulf %59, %59 : vector<32x128xf32>
    %cst_29 = arith.constant dense<0.000000e+00> : vector<32xf32>
    %61 = vector.multi_reduction <add>, %60, %cst_29 [1] : vector<32x128xf32> to vector<32xf32>
    %62 = vector.shape_cast %61 : vector<32xf32> to vector<32x1xf32>
    %cst_30 = arith.constant 1.280000e+02 : f32
    %63 = vector.broadcast %cst_30 : f32 to vector<32x1xf32>
    %64 = arith.divf %62, %63 : vector<32x1xf32>
    %cst_31 = arith.constant 9.99999974E-6 : f32
    %65 = vector.broadcast %cst_31 : f32 to vector<32x1xf32>
    %66 = arith.addf %64, %65 : vector<32x1xf32>
    %67 = math.rsqrt %66 : vector<32x1xf32>
    %68 = vector.broadcast %67 : vector<32x1xf32> to vector<32x128xf32>
    %69 = arith.mulf %59, %68 : vector<32x128xf32>
    %c0_32 = arith.constant 0 : index
    %c0_33 = arith.constant 0 : index
    %70 = vector.load %arg10[%c0_32, %c0_33] : memref<1x128xf32, #tpu.memory_space<vmem>>, vector<1x128xf32>
    %71 = vector.broadcast %70 : vector<1x128xf32> to vector<32x128xf32>
    %72 = arith.mulf %69, %71 : vector<32x128xf32>
    %c0_34 = arith.constant 0 : index
    %c0_35 = arith.constant 0 : index
    %73 = vector.load %arg11[%c0_34, %c0_35] : memref<1x128xf32, #tpu.memory_space<vmem>>, vector<1x128xf32>
    %74 = vector.broadcast %73 : vector<1x128xf32> to vector<32x128xf32>
    %75 = arith.addf %72, %74 : vector<32x128xf32>
    %cst_36 = arith.constant 5.000000e-01 : f32
    %76 = vector.broadcast %cst_36 : f32 to vector<32x128xf32>
    %77 = arith.mulf %76, %75 : vector<32x128xf32>
    %cst_37 = arith.constant 4.471500e-02 : f32
    %78 = vector.broadcast %cst_37 : f32 to vector<32x128xf32>
    %79 = arith.mulf %78, %75 : vector<32x128xf32>
    %80 = arith.mulf %79, %75 : vector<32x128xf32>
    %81 = arith.mulf %80, %75 : vector<32x128xf32>
    %82 = arith.addf %75, %81 : vector<32x128xf32>
    %cst_38 = arith.constant 0.797884583 : f32
    %83 = vector.broadcast %cst_38 : f32 to vector<32x128xf32>
    %84 = arith.mulf %83, %82 : vector<32x128xf32>
    %85 = math.tanh %84 : vector<32x128xf32>
    %cst_39 = arith.constant 1.000000e+00 : f32
    %86 = vector.broadcast %cst_39 : f32 to vector<32x128xf32>
    %87 = arith.addf %86, %85 : vector<32x128xf32>
    %88 = arith.mulf %77, %87 : vector<32x128xf32>
    %c0_40 = arith.constant 0 : index
    %c0_41 = arith.constant 0 : index
    %89 = vector.load %arg12[%c0_40, %c0_41] : memref<32x128xbf16, #tpu.memory_space<vmem>>, vector<32x128xbf16>
    %90 = arith.extf %89 : vector<32x128xbf16> to vector<32x128xf32>
    %91 = arith.addf %88, %90 : vector<32x128xf32>
    %92 = arith.truncf %91 : vector<32x128xf32> to vector<32x128xbf16>
    %c0_42 = arith.constant 0 : index
    %c0_43 = arith.constant 0 : index
    %93 = vector.load %arg13[%c0_42, %c0_43] : memref<128x128xbf16, #tpu.memory_space<vmem>>, vector<128x128xbf16>
    %cst_44 = arith.constant dense<0.000000e+00> : vector<32x128xf32>
    %94 = tpu.matmul %92, %93, %cst_44 {dimension_numbers = #tpu.dot_dimension_numbers<[1], [0], [0], [1], [0, 0, 1, 1], [], []>} : vector<32x128xbf16>, vector<128x128xbf16>, vector<32x128xf32> -> vector<32x128xf32>
    %c0_45 = arith.constant 0 : index
    %c0_46 = arith.constant 0 : index
    %95 = vector.load %arg14[%c0_45, %c0_46] : memref<1x128xf32, #tpu.memory_space<vmem>>, vector<1x128xf32>
    %96 = vector.broadcast %95 : vector<1x128xf32> to vector<32x128xf32>
    %97 = arith.addf %94, %96 : vector<32x128xf32>
    %cst_47 = arith.constant dense<0.000000e+00> : vector<32xf32>
    %98 = vector.multi_reduction <add>, %97, %cst_47 [1] : vector<32x128xf32> to vector<32xf32>
    %99 = vector.shape_cast %98 : vector<32xf32> to vector<32x1xf32>
    %cst_48 = arith.constant 1.280000e+02 : f32
    %100 = vector.broadcast %cst_48 : f32 to vector<32x1xf32>
    %101 = arith.divf %99, %100 : vector<32x1xf32>
    %102 = vector.broadcast %101 : vector<32x1xf32> to vector<32x128xf32>
    %103 = arith.subf %97, %102 : vector<32x128xf32>
    %104 = arith.mulf %103, %103 : vector<32x128xf32>
    %cst_49 = arith.constant dense<0.000000e+00> : vector<32xf32>
    %105 = vector.multi_reduction <add>, %104, %cst_49 [1] : vector<32x128xf32> to vector<32xf32>
    %106 = vector.shape_cast %105 : vector<32xf32> to vector<32x1xf32>
    %cst_50 = arith.constant 1.280000e+02 : f32
    %107 = vector.broadcast %cst_50 : f32 to vector<32x1xf32>
    %108 = arith.divf %106, %107 : vector<32x1xf32>
    %cst_51 = arith.constant 9.99999974E-6 : f32
    %109 = vector.broadcast %cst_51 : f32 to vector<32x1xf32>
    %110 = arith.addf %108, %109 : vector<32x1xf32>
    %111 = math.rsqrt %110 : vector<32x1xf32>
    %112 = vector.broadcast %111 : vector<32x1xf32> to vector<32x128xf32>
    %113 = arith.mulf %103, %112 : vector<32x128xf32>
    %c0_52 = arith.constant 0 : index
    %c0_53 = arith.constant 0 : index
    %114 = vector.load %arg15[%c0_52, %c0_53] : memref<1x128xf32, #tpu.memory_space<vmem>>, vector<1x128xf32>
    %115 = vector.broadcast %114 : vector<1x128xf32> to vector<32x128xf32>
    %116 = arith.mulf %113, %115 : vector<32x128xf32>
    %c0_54 = arith.constant 0 : index
    %c0_55 = arith.constant 0 : index
    %117 = vector.load %arg16[%c0_54, %c0_55] : memref<1x128xf32, #tpu.memory_space<vmem>>, vector<1x128xf32>
    %118 = vector.broadcast %117 : vector<1x128xf32> to vector<32x128xf32>
    %119 = arith.addf %116, %118 : vector<32x128xf32>
    %cst_56 = arith.constant 5.000000e-01 : f32
    %120 = vector.broadcast %cst_56 : f32 to vector<32x128xf32>
    %121 = arith.mulf %120, %119 : vector<32x128xf32>
    %cst_57 = arith.constant 4.471500e-02 : f32
    %122 = vector.broadcast %cst_57 : f32 to vector<32x128xf32>
    %123 = arith.mulf %122, %119 : vector<32x128xf32>
    %124 = arith.mulf %123, %119 : vector<32x128xf32>
    %125 = arith.mulf %124, %119 : vector<32x128xf32>
    %126 = arith.addf %119, %125 : vector<32x128xf32>
    %cst_58 = arith.constant 0.797884583 : f32
    %127 = vector.broadcast %cst_58 : f32 to vector<32x128xf32>
    %128 = arith.mulf %127, %126 : vector<32x128xf32>
    %129 = math.tanh %128 : vector<32x128xf32>
    %cst_59 = arith.constant 1.000000e+00 : f32
    %130 = vector.broadcast %cst_59 : f32 to vector<32x128xf32>
    %131 = arith.addf %130, %129 : vector<32x128xf32>
    %132 = arith.mulf %121, %131 : vector<32x128xf32>
    %c0_60 = arith.constant 0 : index
    %c0_61 = arith.constant 0 : index
    %133 = vector.load %arg17[%c0_60, %c0_61] : memref<32x128xf32, #tpu.memory_space<vmem>>, vector<32x128xf32>
    tpu.vector_store %arg17[%c0_60, %c0_61], %132 {strides = array<i32>} : memref<32x128xf32, #tpu.memory_space<vmem>>, vector<32x128xf32>,
    return
  }
  func.func @transform_0(%arg0: i32) -> (i32, i32) {
    %c0_i32 = arith.constant 0 : i32
    %c0_i32_0 = arith.constant 0 : i32
    return %arg0, %c0_i32 : i32, i32
  }
  func.func @transform_1(%arg0: i32) -> (i32, i32) {
    %c0_i32 = arith.constant 0 : i32
    %c0_i32_0 = arith.constant 0 : i32
    return %arg0, %c0_i32 : i32, i32
  }
  func.func @transform_2(%arg0: i32) -> (i32, i32) {
    %c0_i32 = arith.constant 0 : i32
    %c0_i32_0 = arith.constant 0 : i32
    %c0_i32_1 = arith.constant 0 : i32
    return %c0_i32, %c0_i32_0 : i32, i32
  }
  func.func @transform_3(%arg0: i32) -> (i32, i32) {
    %c0_i32 = arith.constant 0 : i32
    %c0_i32_0 = arith.constant 0 : i32
    %c0_i32_1 = arith.constant 0 : i32
    return %c0_i32, %c0_i32_0 : i32, i32
  }
  func.func @transform_4(%arg0: i32) -> (i32, i32) {
    %c0_i32 = arith.constant 0 : i32
    %c0_i32_0 = arith.constant 0 : i32
    %c0_i32_1 = arith.constant 0 : i32
    return %c0_i32, %c0_i32_0 : i32, i32
  }
  func.func @transform_5(%arg0: i32) -> (i32, i32) {
    %c0_i32 = arith.constant 0 : i32
    %c0_i32_0 = arith.constant 0 : i32
    %c0_i32_1 = arith.constant 0 : i32
    return %c0_i32, %c0_i32_0 : i32, i32
  }
  func.func @transform_6(%arg0: i32) -> (i32, i32) {
    %c0_i32 = arith.constant 0 : i32
    %c0_i32_0 = arith.constant 0 : i32
    return %arg0, %c0_i32 : i32, i32
  }
  func.func @transform_7(%arg0: i32) -> (i32, i32) {
    %c0_i32 = arith.constant 0 : i32
    %c0_i32_0 = arith.constant 0 : i32
    %c0_i32_1 = arith.constant 0 : i32
    return %c0_i32, %c0_i32_0 : i32, i32
  }
  func.func @transform_8(%arg0: i32) -> (i32, i32) {
    %c0_i32 = arith.constant 0 : i32
    %c0_i32_0 = arith.constant 0 : i32
    %c0_i32_1 = arith.constant 0 : i32
    return %c0_i32, %c0_i32_0 : i32, i32
  }
  func.func @transform_9(%arg0: i32) -> (i32, i32) {
    %c0_i32 = arith.constant 0 : i32
    %c0_i32_0 = arith.constant 0 : i32
    %c0_i32_1 = arith.constant 0 : i32
    return %c0_i32, %c0_i32_0 : i32, i32
  }
  func.func @transform_10(%arg0: i32) -> (i32, i32) {
    %c0_i32 = arith.constant 0 : i32
    %c0_i32_0 = arith.constant 0 : i32
    %c0_i32_1 = arith.constant 0 : i32
    return %c0_i32, %c0_i32_0 : i32, i32
  }
  func.func @transform_11(%arg0: i32) -> (i32, i32) {
    %c0_i32 = arith.constant 0 : i32
    %c0_i32_0 = arith.constant 0 : i32
    return %arg0, %c0_i32 : i32, i32
  }
  func.func @transform_12(%arg0: i32) -> (i32, i32) {
    %c0_i32 = arith.constant 0 : i32
    %c0_i32_0 = arith.constant 0 : i32
    %c0_i32_1 = arith.constant 0 : i32
    return %c0_i32, %c0_i32_0 : i32, i32
  }
  func.func @transform_13(%arg0: i32) -> (i32, i32) {
    %c0_i32 = arith.constant 0 : i32
    %c0_i32_0 = arith.constant 0 : i32
    %c0_i32_1 = arith.constant 0 : i32
    return %c0_i32, %c0_i32_0 : i32, i32
  }
  func.func @transform_14(%arg0: i32) -> (i32, i32) {
    %c0_i32 = arith.constant 0 : i32
    %c0_i32_0 = arith.constant 0 : i32
    %c0_i32_1 = arith.constant 0 : i32
    return %c0_i32, %c0_i32_0 : i32, i32
  }
  func.func @transform_15(%arg0: i32) -> (i32, i32) {
    %c0_i32 = arith.constant 0 : i32
    %c0_i32_0 = arith.constant 0 : i32
    %c0_i32_1 = arith.constant 0 : i32
    return %c0_i32, %c0_i32_0 : i32, i32
  }
  func.func @transform_16(%arg0: i32) -> (i32, i32) {
    %c0_i32 = arith.constant 0 : i32
    %c0_i32_0 = arith.constant 0 : i32
    return %arg0, %c0_i32 : i32, i32
  }
}

</mosaic_0001>

<bundles_post_ra>
// kernel: quantum_resistant_forward.3
= control target key start
LH: loop header
LB: loop body
LE: loop exit
PB: predicated region body
PF: predicated region fallthrough
CT: control target
= control target key end

     0   :  { %s2010_s0 = inlined_call_operand.vmem [shape: f32[64,64], index: 0, kind: input, shape index: {}]   ;;  %s2011_s1 = inlined_call_operand.vmem [shape: bf16[64,64], index: 1, kind: input, shape index: {}]   ;;  %s2012_s2 = inlined_call_operand.vmem [shape: bf16[64,128], index: 2, kind: input, shape index: {}]   ;;  %s2013_s3 = inlined_call_operand.vmem [shape: f32[1,128], index: 3, kind: input, shape index: {}]   ;;  %s2014_s4 = inlined_call_operand.vmem [shape: f32[1,128], index: 4, kind: input, shape index: {}]   ;;  %s2015_s5 = inlined_call_operand.vmem [shape: f32[1,128], index: 5, kind: input, shape index: {}]   ;;  %s2016_s6 = inlined_call_operand.vmem [shape: bf16[64,128], index: 6, kind: input, shape index: {}]   ;;  %s2017_s7 = inlined_call_operand.vmem [shape: bf16[128,128], index: 7, kind: input, shape index: {}]   ;;  %s2018_s8 = inlined_call_operand.vmem [shape: f32[1,128], index: 8, kind: input, shape index: {}]   ;;  %s2019_s9 = inlined_call_operand.vmem [shape: f32[1,128], index: 9, kind: input, shape index: {}]   ;;  %s2020_s10 = inlined_call_operand.vmem [shape: f32[1,128], index: 10, kind: input, shape index: {}]   ;;  %s2021_s11 = inlined_call_operand.vmem [shape: bf16[64,128], index: 11, kind: input, shape index: {}]   ;;  %s2022_s12 = inlined_call_operand.vmem [shape: bf16[128,128], index: 12, kind: input, shape index: {}]   ;;  %s2023_s13 = inlined_call_operand.vmem [shape: f32[1,128], index: 13, kind: input, shape index: {}]   ;;  %s2024_s14 = inlined_call_operand.vmem [shape: f32[1,128], index: 14, kind: input, shape index: {}]   ;;  %s2025_s15 = inlined_call_operand.vmem [shape: f32[1,128], index: 15, kind: input, shape index: {}]   ;;  %s2026_s16 = inlined_call_operand.hbm [shape: f32[64,128], index: 16, kind: output, shape index: {}]  }
   0x1   :  { %2036 = sst [smem:[#allocation12_spill]] %s2010_s0 }
   0x2   :  { %2037 = sst [smem:[#allocation13_spill]] %s2026_s16 }
   0x3   :  { %21 = vsyncpa [#allocation3], 0 }
   0x4   :  { %23 = vsyncpa [#allocation3 + $0x1], 0  ;;  %s1808_s21 = smov 0   ;;  %s1810_s22 = smov 0  }
   0x5   :  { %s1812_s23 = smov 0   ;;  %s1814_s24 = smov 0  }
   0x6 LB: > { %2038 = sst [smem:[#allocation5_spill]] %s1706_s21  ;;  %s1829_s25 = sadd.s32 4294967295, %s1718_s24   ;;  %s1718_s24 = sphi %s1814_s24, %s2053_s24   ;;  %s1714_s23 = sphi %s1812_s23, %s2055_s23   ;;  %s1710_s22 = sphi %s1810_s22, %s2057_s22   ;;  %s1706_s21 = sphi %s1808_s21, %s2056_s21  }
   0x7   : > { %2039 = sst [smem:[#allocation6_spill]] %s1714_s23  ;;  %s1394_s26 = sadd.s32 4294967294, %s1718_s24  }
   0x8   : > { %2040 = sst [smem:[#allocation7_spill]] %s1718_s24  ;;  %s1833_s27 = sadd.s32 1, %s1718_s24  }
   0x9   : > { %2041 = sst [smem:[#allocation8_spill]] %s1833_s27  ;;  %s392_s28 = sadd.s32 1, %s1714_s23 }
   0xa   : > { %s389_s29 = ssub.s32 %s1718_s24, %s1833_s27  ;;  %p402_p0 = scmp.ne.s32.totalorder %s1714_s23, %s1710_s22 }
   0xb   : > { %p390_p1 = scmp.eq.s32.totalorder %s389_s29, 0  ;;  %p403_p2 = scmp.eq.s32.totalorder %s1829_s25, 1 }
   0xc   : > { %p408_p3 = scmp.ne.s32.totalorder %s1710_s22, %s1706_s21  ;;  %p409_p4 = scmp.eq.s32.totalorder %s1394_s26, 1 }
   0xd   : > { %s1844_s30 = scalar_select %p390_p1, %s1714_s23, %s392_s28  }
   0xe   : > { %p1846_p5 = por %p403_p2, %p402_p0  ;;  %p1850_p6 = por %p409_p4, %p408_p3 }
   0xf   : > { %2042 = sst [smem:[#allocation9_spill]] %s1844_s30  ;;  %p1397_p7 = scmp.ge.s32.totalorder %s1718_s24, 1 }
  0x10   : > { %s2043_s0 = scalar_select %p1846_p5, 1, 0 }
  0x11   : > { %s2045_s17 = scalar_select %p1850_p6, 1, 0 }
  0x12   : > { %2044 = sst [smem:[#allocation10_spill]] %s2043_s0  ;;  %p499_p8 = scmp.lt.s32.totalorder %s1718_s24, 3 }
  0x13   : > { %2046 = sst [smem:[#allocation11_spill]] %s2045_s17 }
  0x14   : > { %p500_p9 = pnand %p1397_p7, %p499_p8 }
  0x15   : > { %s1399_s20 = sshll.u32 (!%p500_p9), %s1829_s25, 2  ;;  %s2047_s28 = sld [smem:[#allocation12_spill]] (!%p500_p9) }
  0x16   : > { %503 = sbr.rel (%p500_p9) target bundleno = 1683 (0x693), region = 84  ;;  %p565_p10 = scmp.lt.s32.totalorder (!%p500_p9), %s1399_s20, 7 }
  0x17   : > { %s561_s24 = sand.u32 (!%p500_p9), 1, %s1710_s22   ;;  %s1720_s16 = smov (!%p500_p9), [#allocation2]  }
  0x18   : > { %s1398_s30 = sshll.u32 (!%p500_p9), %s561_s24, 5 }
  0x1b   : > { %v1590_v0 = vld [vmem:[%s2012_s2 + $0x18] sm:$0xff]   ;;  %v1591_v1 = vld [vmem:[%s2012_s2 + $0x10] sm:$0xff]   ;;  %v1592_v2 = vld [vmem:[%s2012_s2 + $0x8] sm:$0xff]   ;;  %s2059_s20 = smov (!%p565_p10, %s1399_s20), 7  ;;  %vm647_vm0 = vcmask 523264  }
  0x1c   : > { %1497 = vmatprep.subr.bf16.mxu0 %v1590_v0  ;;  %s1400_s23 = sshll.u32 %s2059_s20, 3  ;;  %s1866_s27 = sshll.u32 %s2059_s20, 2  ;;  %v1593_v3 = vld [vmem:[%s2012_s2] sm:$0xff]   ;;  %v1594_v45 = vld [vmem:[%s2017_s7 + $0x38] sm:$0xff]   ;;  %v1595_v46 = vld [vmem:[%s2017_s7 + $0x30] sm:$0xff]  }
  0x1d   : > { %1498 = vmatpush3.bf16.msra.mxu0 %v1590_v0  ;;  %s568_s21 = scalar_lea.vmem %s2047_s28, %s1400_s23  ;;  %s574_s0 = scalar_lea.vmem %s2011_s1, %s1866_s27  ;;  %v1407_v20 = vld [vmem:[%s2013_s3] ss:$0 sm:$0xff]  ;;  %1509 = vmatprep.subr.bf16.mxu1 %v1594_v45  ;;  %v1596_v47 = vld [vmem:[%s2017_s7 + $0x28] sm:$0xff]   ;;  %v1598_v49 = vld [vmem:[%s2017_s7 + $0x18] sm:$0xff]  }
  0x1e   : > { %1499 = vmatprep.subr.bf16.mxu0 %v1591_v1  ;;  %v590_v4 = vld [vmem:[%s568_s21] sm:$0xff]  ;;  %v591_v5 = vld [vmem:[%s568_s21 + $0x8] sm:$0xff]  ;;  %v592_v10 = vld [vmem:[%s568_s21 + $0x10] sm:$0xff]  ;;  %1510 = vmatpush3.bf16.msra.mxu1 %v1594_v45  ;;  %s580_s26 = scalar_lea.vmem %s2016_s6, %s1866_s27  ;;  %s586_s19 = scalar_lea.vmem %s2021_s11, %s1866_s27 }
  0x1f   : > { %v1445_v6 = vld [vmem:[%s574_s0] sm:$0xff]   ;;  %v1468_v9 = vld [vmem:[%s574_s0 + $0x8] sm:$0xff]   ;;  %v593_v11 = vld [vmem:[%s568_s21 + $0x18] sm:$0xff]  ;;  %1511 = vmatprep.subr.bf16.mxu1 %v1595_v46  ;;  %s563_s0 = scalar_lea.vmem [#allocation2], %s1398_s30  ;;  %s1443_s20 = sshll.u32 %s1829_s25, 9 }
  0x20   : > { %v1446_v7 = vunpack.c.l.bf16 %v1445_v6  ;;  %v1447_v8 = vunpack.c.h.bf16 %v1445_v6  ;;  %v1450_v12 = vunpack.c.l.bf16 %v1468_v9  ;;  %v1451_v13 = vunpack.c.h.bf16 %v1468_v9  ;;  %v1597_v48 = vld [vmem:[%s2017_s7 + $0x20] sm:$0xff]   ;;  %v1599_v50 = vld [vmem:[%s2017_s7 + $0x10] sm:$0xff]   ;;  %v1600_v51 = vld [vmem:[%s2017_s7 + $0x8] sm:$0xff]   ;;  %s1296_s29 = sshll.u32 %s563_s0, 4  ;;  %s2049_s27 = sld [smem:[#allocation13_spill]]  ;;  %s1968_s29 = int_to_ptr.vmem [resolvable:$true] %s1296_s29 }
  0x21   : > { %1500 = vmatpush3.bf16.msra.mxu0 %v1591_v1  ;;  %v1601_v52 = vld [vmem:[%s2017_s7] sm:$0xff]   ;;  %s1970_s25 = scalar_lea.sflag [#allocation3], %s561_s24  ;;  %s1658_s28 = scalar_lea.vmem %s1968_s29, 512 }
  0x22   : > { %1501 = vmatprep.subr.bf16.mxu0 %v1592_v2  ;;  %v602_v14 = vadd.f32 %v1446_v7, %v590_v4  ;;  %v603_v15 = vadd.f32 %v1447_v8, %v591_v5  ;;  %v604_v16 = vadd.f32 %v1450_v12, %v592_v10  ;;  %v605_v17 = vadd.f32 %v1451_v13, %v593_v11  ;;  %v1415_v4 = vld [vmem:[%s2015_s5] ss:$0 sm:$0xff]  ;;  %p1659_p11 = scmp.ne.s32.totalorder %s1968_s29, %s1658_s28  ;;  %s1662_s23 = sshll.u32 %s1720_s16, 4  ;;  %s1663_s23 = int_to_ptr.vmem [resolvable:$false] %s1662_s23 }
  0x23   : > { %1512 = vmatpush3.bf16.msra.mxu1 %v1595_v46  ;;  %s1664_s21 = scalar_lea.vmem %s1663_s23, 1024  ;;  %p1665_p0 = scmp.lt.s32.totalorder %s1968_s29, %s1663_s23 }
  0x24   : > { %v606_v18 = vpack.c.bf16 %v603_v15, %v602_v14  ;;  %v607_v19 = vpack.c.bf16 %v605_v17, %v604_v16  ;;  %1513 = vmatprep.subr.bf16.mxu1 %v1596_v47  ;;  %p1660_p12 = pnand %p1659_p11, %p1846_p5  ;;  %p1666_p1 = scmp.lt.s32.totalorder %s1664_s21, %s1658_s28 }
  0x25   : > { %1502 = vmatpush3.bf16.msra.mxu0 %v1592_v2  ;;  %v1414_v2 = vld [vmem:[%s2014_s4] ss:$0 sm:$0xff] }
  0x26   : > { %1503 = vmatprep.subr.bf16.mxu0 %v1593_v3  ;;  %1505 = vmatprep.mubr.msk.bf16.mxu0 %vm647_vm0, %v606_v18  ;;  %p1661_p13 = pneg %p1660_p12  ;;  %p1667_p2 = por %p1666_p1, %p1665_p0 }
  0x27   : > { %1514 = vmatpush3.bf16.msra.mxu1 %v1596_v47 }
  0x28   : > { %1515 = vmatprep.subr.bf16.mxu1 %v1597_v48  ;;  %p1668_p3 = pnand %p1667_p2, %p1661_p13 }
  0x29   : > { %1504 = vmatpush3.bf16.msra.mxu0 %v1593_v3 }
  0x2b   : > { %1516 = vmatpush3.bf16.msra.mxu1 %v1597_v48 }
  0x2c   : > { %1506 = vmatmul.mubr.msk.bf16.vlgmr.msra.gmra.mxu0 %vm647_vm0, %v607_v19  ;;  %1517 = vmatprep.subr.bf16.mxu1 %v1598_v49 }
  0x2f   : > { %1518 = vmatpush3.bf16.msra.mxu1 %v1598_v49 }
  0x30   : > { %1519 = vmatprep.subr.bf16.mxu1 %v1599_v50 }
  0x33   : > { %1520 = vmatpush3.bf16.msra.mxu1 %v1599_v50  ;;  %v1469_v50 = vld [vmem:[%s580_s26 + $0x8] sm:$0xff]  }
  0x34   : > { %1521 = vmatprep.subr.bf16.mxu1 %v1600_v51 }
  0x37   : > { %1522 = vmatpush3.bf16.msra.mxu1 %v1600_v51 }
  0x38   : > { %1523 = vmatprep.subr.bf16.mxu1 %v1601_v52 }
  0x3b   : > { %1524 = vmatpush3.bf16.msra.mxu1 %v1601_v52 }
  0xec   : > { %v1507_v21 = vpop.f32.mrf.mxu0 }
  0xed   : > { %v697_v22 = vadd.f32 %v1507_v21, %v1407_v20 }
  0xee   : > { %v688_v23 = vpop.f32.mrf.mxu0 }
  0xef   : > { %v689_v24 = vadd.f32 %v1407_v20, %v688_v23  ;;  %707 = vadd.xlane.f32.xlu1 %v697_v22 }
  0xf0   : > { %v1508_v25 = vpop.f32.mrf.mxu0 }
  0xf1   : > { %v700_v26 = vadd.f32 %v1508_v25, %v1407_v20  ;;  %703 = vadd.xlane.f32.xlu0 %v689_v24 }
  0xf2   : > { %v691_v27 = vpop.f32.mrf.mxu0 }
  0xf3   : > { %v692_v28 = vadd.f32 %v1407_v20, %v691_v27  ;;  %709 = vadd.xlane.f32.xlu1 %v700_v26 }
  0xf5   : > { %705 = vadd.xlane.f32.xlu0 %v692_v28 }
 0x178   : > { %v708_v29 = vpop.xlane.xlu1 %707 }
 0x179   : > { %v714_v31 = vmul.f32 0.0078125, %v708_v29 }
 0x17a   : > { %v704_v30 = vpop.xlane.xlu0 %703 }
 0x17b   : > { %v712_v32 = vmul.f32 0.0078125, %v704_v30  ;;  %v718_v36 = vsub.f32 %v697_v22, %v714_v31 }
 0x17c   : > { %v710_v33 = vpop.xlane.xlu1 %709 }
 0x17d   : > { %v716_v34 = vsub.f32 %v689_v24, %v712_v32  ;;  %v715_v37 = vmul.f32 0.0078125, %v710_v33  ;;  %v722_v42 = vmul.f32 %v718_v36, %v718_v36 }
 0x17e   : > { %v706_v35 = vpop.xlane.xlu0 %705 }
 0x17f   : > { %v713_v38 = vmul.f32 0.0078125, %v706_v35  ;;  %v720_v39 = vmul.f32 %v716_v34, %v716_v34  ;;  %v719_v41 = vsub.f32 %v700_v26, %v715_v37 }
 0x181   : > { %v717_v40 = vsub.f32 %v692_v28, %v713_v38  ;;  %724 = vadd.xlane.f32.xlu0 %v720_v39  ;;  %v723_v44 = vmul.f32 %v719_v41, %v719_v41 }
 0x183   : > { %v721_v43 = vmul.f32 %v717_v40, %v717_v40 }
 0x185   : > { %728 = vadd.xlane.f32.xlu0 %v722_v42  ;;  %726 = vadd.xlane.f32.xlu1 %v721_v43 }
 0x189   : > { %730 = vadd.xlane.f32.xlu1 %v723_v44 }
 0x20a   : > { %v725_v53 = vpop.xlane.xlu0 %724 }
 0x20b   : > { %v732_v54 = vmul.f32 0.0078125, %v725_v53 }
 0x20d   : > { %v736_v55 = vadd.f32 1e-05, %v732_v54 }
 0x20e   : > { %v727_v56 = vpop.xlane.xlu1 %726  ;;  %v729_v57 = vpop.xlane.xlu0 %728 }
 0x20f   : > { %1610 = vrsqrt.f32 %v736_v55  ;;  %v733_v58 = vmul.f32 0.0078125, %v727_v56  ;;  %v734_v59 = vmul.f32 0.0078125, %v729_v57  ;;  %v1458_v56 = vunpack.c.l.bf16 %v1469_v50 }
 0x210   : > { %v1459_v57 = vunpack.c.h.bf16 %v1469_v50 }
 0x211   : > { %v737_v60 = vadd.f32 1e-05, %v733_v58  ;;  %v738_v61 = vadd.f32 1e-05, %v734_v59 }
 0x212   : > { %v731_v62 = vpop.xlane.xlu1 %730 }
 0x213   : > { %1612 = vrsqrt.f32 %v737_v60  ;;  %v735_v63 = vmul.f32 0.0078125, %v731_v62 }
 0x214   : > { %1614 = vrsqrt.f32 %v738_v61 }
 0x215   : > { %v739_v0 = vadd.f32 1e-05, %v735_v63 }
 0x217   : > { %1616 = vrsqrt.f32 %v739_v0 }
 0x21c   : > { %v1611_v1 = vpop.eup %1610 }
 0x21d   : > { %v744_v3 = vmul.f32 %v1611_v1, %v716_v34 }
 0x21f   : > { %v755_v5 = vmul.f32 %v1414_v2, %v744_v3 }
 0x220   : > { %v1613_v6 = vpop.eup %1612 }
 0x221   : > { %v1615_v7 = vpop.eup %1614  ;;  %v745_v8 = vmul.f32 %v1613_v6, %v717_v40  ;;  %v766_v9 = vadd.f32 %v1415_v4, %v755_v5 }
 0x222   : > { %v746_v10 = vmul.f32 %v1615_v7, %v718_v36 }
 0x223   : > { %v756_v11 = vmul.f32 %v1414_v2, %v745_v8  ;;  %v774_v12 = vmul.f32 0.044715, %v766_v9  ;;  %v770_v42 = vmul.f32 0.5, %v766_v9 }
 0x224   : > { %v1617_v13 = vpop.eup %1616  ;;  %v757_v14 = vmul.f32 %v1414_v2, %v746_v10 }
 0x225   : > { %v747_v15 = vmul.f32 %v1617_v13, %v719_v41  ;;  %v767_v16 = vadd.f32 %v1415_v4, %v756_v11  ;;  %v778_v17 = vmul.f32 %v774_v12, %v766_v9  ;;  %v1453_v41 = vld [vmem:[%s580_s26] sm:$0xff]   ;;  %s1966_s26 = scalar_lea.hbm %s2049_s27, %s1443_s20 }
 0x226   : > { %v768_v18 = vadd.f32 %v1415_v4, %v757_v14  ;;  %v1454_v44 = vunpack.c.l.bf16 %v1453_v41  ;;  %v1455_v49 = vunpack.c.h.bf16 %v1453_v41 }
 0x227   : > { %v758_v19 = vmul.f32 %v1414_v2, %v747_v15  ;;  %v775_v20 = vmul.f32 0.044715, %v767_v16  ;;  %v782_v21 = vmul.f32 %v778_v17, %v766_v9  ;;  %v771_v46 = vmul.f32 0.5, %v767_v16 }
 0x228   : > { %v776_v22 = vmul.f32 0.044715, %v768_v18  ;;  %v772_v53 = vmul.f32 0.5, %v768_v18 }
 0x229   : > { %v769_v23 = vadd.f32 %v1415_v4, %v758_v19  ;;  %v779_v24 = vmul.f32 %v775_v20, %v767_v16  ;;  %v786_v25 = vadd.f32 %v782_v21, %v766_v9  ;;  %v1416_v4 = vld [vmem:[%s2018_s8] ss:$0 sm:$0xff] }
 0x22a   : > { %v780_v26 = vmul.f32 %v776_v22, %v768_v18 }
 0x22b   : > { %v783_v27 = vmul.f32 %v779_v24, %v767_v16  ;;  %v790_v28 = vmul.f32 0.7978846, %v786_v25  ;;  %v777_v29 = vmul.f32 0.044715, %v769_v23  ;;  %v773_v55 = vmul.f32 0.5, %v769_v23 }
 0x22c   : > { %v784_v30 = vmul.f32 %v780_v26, %v768_v18 }
 0x22d   : > { %v787_v31 = vadd.f32 %v783_v27, %v767_v16  ;;  %1618 = vtanh.f32 %v790_v28  ;;  %v781_v32 = vmul.f32 %v777_v29, %v769_v23  ;;  %v1602_v28 = vld [vmem:[%s2022_s12 + $0x38] sm:$0xff]   ;;  %v1603_v29 = vld [vmem:[%s2022_s12 + $0x30] sm:$0xff]  }
 0x22e   : > { %v788_v33 = vadd.f32 %v784_v30, %v768_v18  ;;  %1529 = vmatprep.subr.bf16.mxu0 %v1602_v28  ;;  %v1604_v30 = vld [vmem:[%s2022_s12 + $0x28] sm:$0xff]  }
 0x22f   : > { %v791_v34 = vmul.f32 0.7978846, %v787_v31  ;;  %v785_v35 = vmul.f32 %v781_v32, %v769_v23  ;;  %1530 = vmatpush3.bf16.msra.mxu0 %v1602_v28  ;;  %v1605_v31 = vld [vmem:[%s2022_s12 + $0x20] sm:$0xff]   ;;  %v1606_v32 = vld [vmem:[%s2022_s12 + $0x18] sm:$0xff]  }
 0x230   : > { %v792_v36 = vmul.f32 0.7978846, %v788_v33  ;;  %1531 = vmatprep.subr.bf16.mxu0 %v1603_v29  ;;  %v1607_v33 = vld [vmem:[%s2022_s12 + $0x10] sm:$0xff]  }
 0x231   : > { %1620 = vtanh.f32 %v791_v34  ;;  %v789_v37 = vadd.f32 %v785_v35, %v769_v23  ;;  %v1608_v34 = vld [vmem:[%s2022_s12 + $0x8] sm:$0xff]   ;;  %v1609_v35 = vld [vmem:[%s2022_s12] sm:$0xff]  }
 0x232   : > { %1622 = vtanh.f32 %v792_v36 }
 0x233   : > { %v793_v38 = vmul.f32 0.7978846, %v789_v37  ;;  %1532 = vmatpush3.bf16.msra.mxu0 %v1603_v29 }
 0x234   : > { %1533 = vmatprep.subr.bf16.mxu0 %v1604_v30 }
 0x235   : > { %1624 = vtanh.f32 %v793_v38 }
 0x237   : > { %1534 = vmatpush3.bf16.msra.mxu0 %v1604_v30 }
 0x238   : > { %1535 = vmatprep.subr.bf16.mxu0 %v1605_v31 }
 0x23a   : > { %v1619_v39 = vpop.eup %1618 }
 0x23b   : > { %v798_v40 = vadd.f32 1.0, %v1619_v39  ;;  %1536 = vmatpush3.bf16.msra.mxu0 %v1605_v31 }
 0x23c   : > { %1537 = vmatprep.subr.bf16.mxu0 %v1606_v32 }
 0x23d   : > { %v802_v48 = vmul.f32 %v798_v40, %v770_v42 }
 0x23e   : > { %v1621_v43 = vpop.eup %1620 }
 0x23f   : > { %v1623_v45 = vpop.eup %1622  ;;  %v799_v47 = vadd.f32 1.0, %v1621_v43  ;;  %v814_v58 = vadd.f32 %v1454_v44, %v802_v48  ;;  %1538 = vmatpush3.bf16.msra.mxu0 %v1606_v32 }
 0x240   : > { %v800_v51 = vadd.f32 1.0, %v1623_v45  ;;  %1539 = vmatprep.subr.bf16.mxu0 %v1607_v33 }
 0x241   : > { %v803_v52 = vmul.f32 %v799_v47, %v771_v46 }
 0x242   : > { %v1625_v54 = vpop.eup %1624  ;;  %v804_v61 = vmul.f32 %v800_v51, %v772_v53  ;;  %v1426_v51 = vld [vmem:[%s2020_s10] ss:$0 sm:$0xff] }
 0x243   : > { %v815_v59 = vadd.f32 %v1455_v49, %v803_v52  ;;  %v801_v60 = vadd.f32 1.0, %v1625_v54  ;;  %1540 = vmatpush3.bf16.msra.mxu0 %v1607_v33  ;;  %v1425_v49 = vld [vmem:[%s2019_s9] ss:$0 sm:$0xff]  ;;  %v1470_v33 = vld [vmem:[%s586_s19 + $0x8] sm:$0xff]  }
 0x244   : > { %v816_v0 = vadd.f32 %v1458_v56, %v804_v61  ;;  %1541 = vmatprep.subr.bf16.mxu0 %v1608_v34 }
 0x245   : > { %v818_v62 = vpack.c.bf16 %v815_v59, %v814_v58  ;;  %v805_v63 = vmul.f32 %v801_v60, %v773_v55 }
 0x247   : > { %1525 = vmatprep.mubr.bf16.mxu1 %v818_v62  ;;  %v817_v1 = vadd.f32 %v1459_v57, %v805_v63  ;;  %1542 = vmatpush3.bf16.msra.mxu0 %v1608_v34 }
 0x248   : > { %1543 = vmatprep.subr.bf16.mxu0 %v1609_v35 }
 0x249   : > { %v819_v2 = vpack.c.bf16 %v817_v1, %v816_v0 }
 0x24b   : > { %1526 = vmatmul.mubr.bf16.vlgmr.msra.gmra.mxu1 %v819_v2  ;;  %1544 = vmatpush3.bf16.msra.mxu0 %v1609_v35 }
 0x30b   : > { %v1527_v3 = vpop.f32.mrf.mxu1 }
 0x30c   : > { %v934_v9 = vadd.f32 %v1527_v3, %v1416_v4 }
 0x30d   : > { %v925_v5 = vpop.f32.mrf.mxu1 }
 0x30e   : > { %v926_v6 = vadd.f32 %v1416_v4, %v925_v5 }
 0x30f   : > { %v1528_v7 = vpop.f32.mrf.mxu1 }
 0x310   : > { %940 = vadd.xlane.f32.xlu0 %v926_v6  ;;  %v937_v11 = vadd.f32 %v1528_v7, %v1416_v4 }
 0x311   : > { %v928_v8 = vpop.f32.mrf.mxu1 }
 0x312   : > { %v929_v10 = vadd.f32 %v1416_v4, %v928_v8 }
 0x314   : > { %942 = vadd.xlane.f32.xlu1 %v929_v10  ;;  %944 = vadd.xlane.f32.xlu0 %v934_v9 }
 0x318   : > { %946 = vadd.xlane.f32.xlu1 %v937_v11 }
 0x399   : > { %v941_v12 = vpop.xlane.xlu0 %940 }
 0x39a   : > { %v948_v13 = vmul.f32 0.0078125, %v941_v12 }
 0x39c   : > { %v952_v14 = vsub.f32 %v926_v6, %v948_v13 }
 0x39d   : > { %v943_v15 = vpop.xlane.xlu1 %942  ;;  %v945_v16 = vpop.xlane.xlu0 %944 }
 0x39e   : > { %v949_v17 = vmul.f32 0.0078125, %v943_v15  ;;  %v950_v18 = vmul.f32 0.0078125, %v945_v16  ;;  %v956_v19 = vmul.f32 %v952_v14, %v952_v14 }
 0x3a0   : > { %v953_v20 = vsub.f32 %v929_v10, %v949_v17  ;;  %v954_v21 = vsub.f32 %v934_v9, %v950_v18  ;;  %960 = vadd.xlane.f32.xlu0 %v956_v19 }
 0x3a1   : > { %v947_v22 = vpop.xlane.xlu1 %946 }
 0x3a2   : > { %v951_v23 = vmul.f32 0.0078125, %v947_v22  ;;  %v957_v24 = vmul.f32 %v953_v20, %v953_v20  ;;  %v958_v25 = vmul.f32 %v954_v21, %v954_v21 }
 0x3a4   : > { %v955_v26 = vsub.f32 %v937_v11, %v951_v23  ;;  %962 = vadd.xlane.f32.xlu1 %v957_v24  ;;  %964 = vadd.xlane.f32.xlu0 %v958_v25  ;;  %v1461_v24 = vld [vmem:[%s586_s19] sm:$0xff]  }
 0x3a5   : > { %v1463_v32 = vunpack.c.h.bf16 %v1461_v24 }
 0x3a6   : > { %v959_v27 = vmul.f32 %v955_v26, %v955_v26 }
 0x3a8   : > { %966 = vadd.xlane.f32.xlu1 %v959_v27  ;;  %v1462_v27 = vunpack.c.l.bf16 %v1461_v24  ;;  %v1436_v24 = vld [vmem:[%s2024_s14] ss:$0 sm:$0xff] }
 0x429   : > { %v961_v36 = vpop.xlane.xlu0 %960 }
 0x42a   : > { %v968_v37 = vmul.f32 0.0078125, %v961_v36 }
 0x42c   : > { %v972_v38 = vadd.f32 1e-05, %v968_v37 }
 0x42d   : > { %v963_v39 = vpop.xlane.xlu1 %962  ;;  %v965_v40 = vpop.xlane.xlu0 %964 }
 0x42e   : > { %1626 = vrsqrt.f32 %v972_v38  ;;  %v969_v41 = vmul.f32 0.0078125, %v963_v39  ;;  %v970_v42 = vmul.f32 0.0078125, %v965_v40  ;;  %v1466_v39 = vunpack.c.l.bf16 %v1470_v33 }
 0x42f   : > { %v1467_v40 = vunpack.c.h.bf16 %v1470_v33 }
 0x430   : > { %v973_v43 = vadd.f32 1e-05, %v969_v41  ;;  %v974_v44 = vadd.f32 1e-05, %v970_v42 }
 0x431   : > { %v967_v45 = vpop.xlane.xlu1 %966 }
 0x432   : > { %1628 = vrsqrt.f32 %v973_v43  ;;  %v971_v46 = vmul.f32 0.0078125, %v967_v45 }
 0x433   : > { %1630 = vrsqrt.f32 %v974_v44 }
 0x434   : > { %v975_v47 = vadd.f32 1e-05, %v971_v46 }
 0x436   : > { %1632 = vrsqrt.f32 %v975_v47 }
 0x43b   : > { %v1627_v48 = vpop.eup %1626 }
 0x43c   : > { %v980_v50 = vmul.f32 %v1627_v48, %v952_v14 }
 0x43e   : > { %v991_v52 = vmul.f32 %v1425_v49, %v980_v50 }
 0x43f   : > { %v1629_v53 = vpop.eup %1628 }
 0x440   : > { %v1631_v54 = vpop.eup %1630  ;;  %v1002_v55 = vadd.f32 %v1426_v51, %v991_v52  ;;  %v981_v56 = vmul.f32 %v1629_v53, %v953_v20 }
 0x441   : > { %v982_v57 = vmul.f32 %v1631_v54, %v954_v21 }
 0x442   : > { %v992_v58 = vmul.f32 %v1425_v49, %v981_v56  ;;  %v1010_v59 = vmul.f32 0.044715, %v1002_v55  ;;  %v1006_v25 = vmul.f32 0.5, %v1002_v55 }
 0x443   : > { %v1633_v60 = vpop.eup %1632  ;;  %v993_v61 = vmul.f32 %v1425_v49, %v982_v57 }
 0x444   : > { %v1003_v62 = vadd.f32 %v1426_v51, %v992_v58  ;;  %v983_v63 = vmul.f32 %v1633_v60, %v955_v26  ;;  %v1014_v0 = vmul.f32 %v1010_v59, %v1002_v55 }
 0x445   : > { %v1004_v1 = vadd.f32 %v1426_v51, %v993_v61 }
 0x446   : > { %v994_v2 = vmul.f32 %v1425_v49, %v983_v63  ;;  %v1011_v3 = vmul.f32 0.044715, %v1003_v62  ;;  %v1018_v4 = vmul.f32 %v1014_v0, %v1002_v55  ;;  %v1007_v29 = vmul.f32 0.5, %v1003_v62 }
 0x447   : > { %v1012_v5 = vmul.f32 0.044715, %v1004_v1  ;;  %v1008_v36 = vmul.f32 0.5, %v1004_v1 }
 0x448   : > { %v1005_v6 = vadd.f32 %v1426_v51, %v994_v2  ;;  %v1015_v7 = vmul.f32 %v1011_v3, %v1003_v62  ;;  %v1022_v8 = vadd.f32 %v1018_v4, %v1002_v55  ;;  %v1427_v51 = vld [vmem:[%s2023_s13] ss:$0 sm:$0xff] }
 0x449   : > { %v1016_v9 = vmul.f32 %v1012_v5, %v1004_v1 }
 0x44a   : > { %v1019_v10 = vmul.f32 %v1015_v7, %v1003_v62  ;;  %v1026_v11 = vmul.f32 0.7978846, %v1022_v8  ;;  %v1013_v12 = vmul.f32 0.044715, %v1005_v6  ;;  %v1009_v38 = vmul.f32 0.5, %v1005_v6 }
 0x44b   : > { %v1020_v13 = vmul.f32 %v1016_v9, %v1004_v1 }
 0x44c   : > { %v1023_v14 = vadd.f32 %v1019_v10, %v1003_v62  ;;  %1634 = vtanh.f32 %v1026_v11  ;;  %v1017_v15 = vmul.f32 %v1013_v12, %v1005_v6 }
 0x44d   : > { %v1024_v16 = vadd.f32 %v1020_v13, %v1004_v1 }
 0x44e   : > { %v1027_v17 = vmul.f32 0.7978846, %v1023_v14  ;;  %v1021_v18 = vmul.f32 %v1017_v15, %v1005_v6 }
 0x44f   : > { %v1028_v19 = vmul.f32 0.7978846, %v1024_v16 }
 0x450   : > { %1636 = vtanh.f32 %v1027_v17  ;;  %v1025_v20 = vadd.f32 %v1021_v18, %v1005_v6 }
 0x451   : > { %1638 = vtanh.f32 %v1028_v19 }
 0x452   : > { %v1029_v21 = vmul.f32 0.7978846, %v1025_v20 }
 0x454   : > { %1640 = vtanh.f32 %v1029_v21 }
 0x459   : > { %v1635_v22 = vpop.eup %1634 }
 0x45a   : > { %v1034_v23 = vadd.f32 1.0, %v1635_v22 }
 0x45c   : > { %v1038_v31 = vmul.f32 %v1034_v23, %v1006_v25 }
 0x45d   : > { %v1637_v26 = vpop.eup %1636 }
 0x45e   : > { %v1639_v28 = vpop.eup %1638  ;;  %v1035_v30 = vadd.f32 1.0, %v1637_v26  ;;  %v1050_v41 = vadd.f32 %v1462_v27, %v1038_v31  ;;  %v1437_v26 = vld [vmem:[%s2025_s15] ss:$0 sm:$0xff] }
 0x45f   : > { %v1036_v34 = vadd.f32 1.0, %v1639_v28 }
 0x460   : > { %v1039_v35 = vmul.f32 %v1035_v30, %v1007_v29 }
 0x461   : > { %v1641_v37 = vpop.eup %1640  ;;  %v1040_v44 = vmul.f32 %v1036_v34, %v1008_v36 }
 0x462   : > { %v1051_v42 = vadd.f32 %v1463_v32, %v1039_v35  ;;  %v1037_v43 = vadd.f32 1.0, %v1641_v37 }
 0x463   : > { %v1052_v47 = vadd.f32 %v1466_v39, %v1040_v44 }
 0x464   : > { %v1054_v45 = vpack.c.bf16 %v1051_v42, %v1050_v41  ;;  %v1041_v46 = vmul.f32 %v1037_v43, %v1009_v38 }
 0x466   : > { %1545 = vmatprep.mubr.bf16.mxu0 %v1054_v45  ;;  %v1053_v48 = vadd.f32 %v1467_v40, %v1041_v46 }
 0x468   : > { %v1055_v49 = vpack.c.bf16 %v1053_v48, %v1052_v47 }
 0x46a   : > { %1546 = vmatmul.mubr.bf16.vlgmr.msra.gmra.mxu0 %v1055_v49 }
 0x52a   : > { %v1547_v50 = vpop.f32.mrf.mxu0 }
 0x52b   : > { %v1170_v56 = vadd.f32 %v1547_v50, %v1427_v51 }
 0x52c   : > { %v1161_v52 = vpop.f32.mrf.mxu0 }
 0x52d   : > { %v1162_v53 = vadd.f32 %v1427_v51, %v1161_v52 }
 0x52e   : > { %v1548_v54 = vpop.f32.mrf.mxu0 }
 0x52f   : > { %1176 = vadd.xlane.f32.xlu0 %v1162_v53  ;;  %v1173_v58 = vadd.f32 %v1548_v54, %v1427_v51 }
 0x530   : > { %v1164_v55 = vpop.f32.mrf.mxu0 }
 0x531   : > { %v1165_v57 = vadd.f32 %v1427_v51, %v1164_v55 }
 0x533   : > { %1178 = vadd.xlane.f32.xlu1 %v1165_v57  ;;  %1180 = vadd.xlane.f32.xlu0 %v1170_v56 }
 0x537   : > { %1182 = vadd.xlane.f32.xlu1 %v1173_v58 }
 0x5b8   : > { %v1177_v59 = vpop.xlane.xlu0 %1176 }
 0x5b9   : > { %v1184_v60 = vmul.f32 0.0078125, %v1177_v59 }
 0x5bb   : > { %v1188_v61 = vsub.f32 %v1162_v53, %v1184_v60 }
 0x5bc   : > { %v1179_v62 = vpop.xlane.xlu1 %1178  ;;  %v1181_v63 = vpop.xlane.xlu0 %1180 }
 0x5bd   : > { %v1185_v0 = vmul.f32 0.0078125, %v1179_v62  ;;  %v1186_v1 = vmul.f32 0.0078125, %v1181_v63  ;;  %v1192_v2 = vmul.f32 %v1188_v61, %v1188_v61 }
 0x5bf   : > { %v1189_v3 = vsub.f32 %v1165_v57, %v1185_v0  ;;  %v1190_v4 = vsub.f32 %v1170_v56, %v1186_v1  ;;  %1196 = vadd.xlane.f32.xlu0 %v1192_v2 }
 0x5c0   : > { %v1183_v5 = vpop.xlane.xlu1 %1182 }
 0x5c1   : > { %v1187_v6 = vmul.f32 0.0078125, %v1183_v5  ;;  %v1193_v7 = vmul.f32 %v1189_v3, %v1189_v3  ;;  %v1194_v8 = vmul.f32 %v1190_v4, %v1190_v4 }
 0x5c3   : > { %v1191_v9 = vsub.f32 %v1173_v58, %v1187_v6  ;;  %1198 = vadd.xlane.f32.xlu1 %v1193_v7  ;;  %1200 = vadd.xlane.f32.xlu0 %v1194_v8 }
 0x5c5   : > { %v1195_v10 = vmul.f32 %v1191_v9, %v1191_v9 }
 0x5c7   : > { %1202 = vadd.xlane.f32.xlu1 %v1195_v10 }
 0x648   : > { %v1197_v11 = vpop.xlane.xlu0 %1196 }
 0x649   : > { %v1204_v12 = vmul.f32 0.0078125, %v1197_v11 }
 0x64b   : > { %v1208_v13 = vadd.f32 1e-05, %v1204_v12 }
 0x64c   : > { %v1199_v14 = vpop.xlane.xlu1 %1198  ;;  %v1201_v15 = vpop.xlane.xlu0 %1200 }
 0x64d   : > { %1642 = vrsqrt.f32 %v1208_v13  ;;  %v1205_v16 = vmul.f32 0.0078125, %v1199_v14  ;;  %v1206_v17 = vmul.f32 0.0078125, %v1201_v15 }
 0x64f   : > { %v1209_v18 = vadd.f32 1e-05, %v1205_v16  ;;  %v1210_v19 = vadd.f32 1e-05, %v1206_v17 }
 0x650   : > { %v1203_v20 = vpop.xlane.xlu1 %1202 }
 0x651   : > { %1644 = vrsqrt.f32 %v1209_v18  ;;  %v1207_v21 = vmul.f32 0.0078125, %v1203_v20 }
 0x652   : > { %1646 = vrsqrt.f32 %v1210_v19 }
 0x653   : > { %v1211_v22 = vadd.f32 1e-05, %v1207_v21 }
 0x655   : > { %1648 = vrsqrt.f32 %v1211_v22 }
 0x65a   : > { %v1643_v23 = vpop.eup %1642 }
 0x65b   : > { %v1216_v25 = vmul.f32 %v1643_v23, %v1188_v61 }
 0x65d   : > { %v1227_v27 = vmul.f32 %v1436_v24, %v1216_v25 }
 0x65e   : > { %v1645_v28 = vpop.eup %1644 }
 0x65f   : > { %v1647_v29 = vpop.eup %1646  ;;  %v1238_v30 = vadd.f32 %v1437_v26, %v1227_v27  ;;  %v1217_v31 = vmul.f32 %v1645_v28, %v1189_v3 }
 0x660   : > { %v1218_v32 = vmul.f32 %v1647_v29, %v1190_v4 }
 0x661   : > { %v1246_v33 = vmul.f32 0.044715, %v1238_v30  ;;  %v1228_v34 = vmul.f32 %v1436_v24, %v1217_v31  ;;  %v1242_v62 = vmul.f32 0.5, %v1238_v30 }
 0x662   : > { %v1649_v35 = vpop.eup %1648  ;;  %v1229_v36 = vmul.f32 %v1436_v24, %v1218_v32 }
 0x663   : > { %v1250_v37 = vmul.f32 %v1246_v33, %v1238_v30  ;;  %v1239_v38 = vadd.f32 %v1437_v26, %v1228_v34  ;;  %v1219_v39 = vmul.f32 %v1649_v35, %v1191_v9 }
 0x664   : > { %v1240_v40 = vadd.f32 %v1437_v26, %v1229_v36 }
 0x665   : > { %v1247_v41 = vmul.f32 0.044715, %v1239_v38  ;;  %v1230_v42 = vmul.f32 %v1436_v24, %v1219_v39  ;;  %v1254_v43 = vmul.f32 %v1250_v37, %v1238_v30  ;;  %v1243_v3 = vmul.f32 0.5, %v1239_v38 }
 0x666   : > { %v1248_v44 = vmul.f32 0.044715, %v1240_v40  ;;  %v1244_v5 = vmul.f32 0.5, %v1240_v40 }
 0x667   : > { %v1251_v45 = vmul.f32 %v1247_v41, %v1239_v38  ;;  %v1241_v46 = vadd.f32 %v1437_v26, %v1230_v42  ;;  %v1258_v47 = vadd.f32 %v1254_v43, %v1238_v30 }
 0x668   : > { %v1252_v48 = vmul.f32 %v1248_v44, %v1240_v40 }
 0x669   : > { %v1249_v49 = vmul.f32 0.044715, %v1241_v46  ;;  %v1255_v50 = vmul.f32 %v1251_v45, %v1239_v38  ;;  %v1262_v51 = vmul.f32 0.7978846, %v1258_v47  ;;  %v1245_v10 = vmul.f32 0.5, %v1241_v46 }
 0x66a   : > { %v1256_v52 = vmul.f32 %v1252_v48, %v1240_v40 }
 0x66b   : > { %v1253_v53 = vmul.f32 %v1249_v49, %v1241_v46  ;;  %v1259_v54 = vadd.f32 %v1255_v50, %v1239_v38  ;;  %1650 = vtanh.f32 %v1262_v51 }
 0x66c   : > { %v1260_v55 = vadd.f32 %v1256_v52, %v1240_v40 }
 0x66d   : > { %v1257_v56 = vmul.f32 %v1253_v53, %v1241_v46  ;;  %v1263_v57 = vmul.f32 0.7978846, %v1259_v54 }
 0x66e   : > { %v1264_v58 = vmul.f32 0.7978846, %v1260_v55 }
 0x66f   : > { %v1261_v59 = vadd.f32 %v1257_v56, %v1241_v46  ;;  %1652 = vtanh.f32 %v1263_v57 }
 0x670   : > { %1654 = vtanh.f32 %v1264_v58 }
 0x671   : > { %v1265_v60 = vmul.f32 0.7978846, %v1261_v59 }
 0x673   : > { %1656 = vtanh.f32 %v1265_v60 }
 0x678   : > { %v1651_v61 = vpop.eup %1650 }
 0x679   : > { %v1270_v63 = vadd.f32 1.0, %v1651_v61 }
 0x67b   : > { %v1274_v0 = vmul.f32 %v1270_v63, %v1242_v62 }
 0x67c   : > { %v1653_v1 = vpop.eup %1652 }
 0x67d   : > { %v1655_v2 = vpop.eup %1654  ;;  %v1271_v4 = vadd.f32 1.0, %v1653_v1  ;;  %1278 = vst [vmem:[%s563_s0] sm:$0xff] %v1274_v0 }
 0x67e   : > { %v1272_v6 = vadd.f32 1.0, %v1655_v2 }
 0x67f   : > { %v1275_v7 = vmul.f32 %v1271_v4, %v1243_v3 }
 0x680   : > { %v1657_v8 = vpop.eup %1656  ;;  %v1276_v9 = vmul.f32 %v1272_v6, %v1244_v5 }
 0x681   : > { %v1273_v11 = vadd.f32 1.0, %v1657_v8  ;;  %1279 = vst [vmem:[%s563_s0 + $0x8] sm:$0xff] %v1275_v7 }
 0x682   : > { %1280 = vst [vmem:[%s563_s0 + $0x10] sm:$0xff] %v1276_v9 }
 0x683   : > { %v1277_v12 = vmul.f32 %v1273_v11, %v1245_v10 }
 0x685   : > { %1281 = vst [vmem:[%s563_s0 + $0x18] sm:$0xff] %v1277_v12 }
 0x686   : > { %1671 = shalt.err (!%p1668_p3)
}
 0x687   : > { %s1672_s24 = scalar_lea.hbm %s1966_s26, 512  ;;  %s1676_s20 = scalar_lea.hbm %s2049_s27, 1024 }
 0x688   : > { %p1673_p4 = scmp.ne.s32.totalorder %s1966_s26, %s1672_s24  ;;  %p1677_p9 = scmp.lt.s32.totalorder %s1966_s26, %s2049_s27 }
 0x689   : > { %p1678_p10 = scmp.lt.s32.totalorder %s1676_s20, %s1672_s24 }
 0x68a   : > { %p1674_p7 = pnand %p1673_p4, %p1846_p5 }
 0x68b   : > { %p1679_p11 = por %p1678_p10, %p1677_p9 }
 0x68c   : > { %p1675_p8 = pneg %p1674_p7 }
 0x68e   : > { %p1680_p12 = pnand %p1679_p11, %p1675_p8 }
 0x690   : > { %1683 = shalt.err (!%p1680_p12)
}
 0x691   : > { %s1721_s28 = smov 128   ;;  %s1722_s16 = smov 8  }
 0x692   : > { %1549 = dma.vmem_to_hbm [thread:$0]  (%p1846_p5), %s1968_s29, 512, %s1966_s26, %s1970_s25, %s1721_s28, %s1721_s28, %s1722_s16  }
 0x693 PF: > { %s2050_s23 = sld [smem:[#allocation7_spill]] }
 0x694   : > { %s2051_s21 = sld [smem:[#allocation5_spill]] }
 0x699   : > { %p1555_p13 = scmp.ge.s32.totalorder %s2050_s23, 2 }
 0x69a   : > { %s1311_s0 = sand.u32 1, %s2051_s21  }
 0x69b   : > { %p1552_p0 = pnand %p1555_p13, %p1850_p6  ;;  %s1312_s24 = scalar_lea.sflag [#allocation3], %s1311_s0 }
 0x69d   : > { %p1553_p1 = pneg %p1552_p0 }
 0x69f   : > { %1701 = dma.done.wait (%p1553_p1), %s1312_s24, 512  }
 0x6a0   : > { %1703 = vsyncadd (%p1553_p1), %s1312_s24, 4294966784  ;;  %s2053_s24 = sld [smem:[#allocation8_spill]]  ;;  %s2056_s21 = smov %s1710_s22 }
 0x6a1   : > { %s2054_s20 = sld [smem:[#allocation6_spill]] }
 0x6a2   : > { %s2055_s23 = sld [smem:[#allocation9_spill]] }
 0x6a6   : > { %p26_p2 = scmp.ge.s32.totalorder %s2053_s24, 4  }
 0x6a7   : > { %s2057_s22 = smov %s2054_s20 }
 0x6a8   :  { %28 = sbr.rel (!%p26_p2) target bundleno = 6 (0x6), region = 128 }
 0x6ad   :  { %1317 = vsyncpa [#allocation3], 1 }
 0x6ae   :  { %1319 = vsyncpa [#allocation3 + $0x1], 1 }

</bundles_post_ra>
